<compile_context>
chip_gen: v6e
topology: v6e:2x2x1
jax: 0.10.0
libtpu: 0.0.40
codegen_flags: <defaults>
</compile_context>

<pallas_src>
import functools
import math

import jax
import jax.numpy as jnp
from jax.experimental import pallas as pl
from jax.experimental.pallas import tpu as pltpu


def _round_up(v, m):
    return (v + m - 1) // m * m


# ---------------------------------------------------------------------------
# Feature probe: single-buffered grid-invariant inputs via pl.Buffered(1).
# ---------------------------------------------------------------------------
def _probe_kernel(x_ref, o_ref):
    o_ref[...] = x_ref[...]


@functools.cache
def _single_buffer_supported():
    """True if pipeline_mode=pl.Buffered(1) compiles/runs on this install."""
    try:
        spec = pl.BlockSpec((8, 128), lambda i: (0, 0),
                            pipeline_mode=pl.Buffered(1))
        out = pl.pallas_call(
            _probe_kernel,
            out_shape=jax.ShapeDtypeStruct((8, 128), jnp.float32),
            grid=(2,),
            in_specs=[spec],
            out_specs=pl.BlockSpec((8, 128), lambda i: (0, 0)),
        )(jnp.zeros((8, 128), jnp.float32))
        jax.block_until_ready(out)
        return True
    except Exception:
        return False


# ---------------------------------------------------------------------------
# Fused MLP kernel: h = relu(h @ W_l + b_l) for every layer, all in VMEM.
# ---------------------------------------------------------------------------
def _make_mlp_kernel(num_layers, cin, cin_pad):
    pad_input = cin != cin_pad

    def kernel(x_ref, *refs):
        o_ref = refs[2 * num_layers]
        if pad_input:
            xpad_ref = refs[2 * num_layers + 1]
            # Zero-extend the narrow input tile (TM, cin) to a lane-dense
            # (TM, cin_pad) tile in VMEM.  Zero every step (a few KiB of VMEM
            # stores) rather than only at program_id==0: on megacore parts each
            # TensorCore owns a slice of the row grid, so step 0 may never run
            # on core 1 and its scratch would otherwise hold garbage.
            xpad_ref[...] = jnp.zeros_like(xpad_ref)
            xpad_ref[:, :cin] = x_ref[...]
            h = xpad_ref[...]
        else:
            h = x_ref[...]
        for i in range(num_layers):
            w = refs[2 * i][...]        # (K_pad, N_pad) bfloat16, pre-transposed
            b = refs[2 * i + 1][...]    # (1, N_pad) float32
            # bf16 MXU matmul with f32 accumulation; bias-add / ReLU in f32.
            h = jnp.dot(h.astype(w.dtype), w, preferred_element_type=jnp.float32)
            h = jnp.maximum(h + b, 0.0)
        o_ref[...] = h.astype(o_ref.dtype)

    return kernel


# ---------------------------------------------------------------------------
# One-time weight packing (hoisted out of the per-call path).
# ---------------------------------------------------------------------------
def pack_params(params):
    """Transpose PyTorch-layout weights (out,in) -> (in,out), zero-pad channel
    dims to multiples of 128 (mathematically inert: zero rows/cols + zero
    bias), cast weights to bf16.  Returns (packed_arrays, dims)."""
    assert len(params) >= 1, "MetaInfoModel needs at least one Linear layer"
    cin = params[0][0].shape[1]
    dims = [cin]
    packed = []
    prev, prev_pad = cin, _round_up(cin, 128)
    for (w, b) in params:
        cout, cin_w = w.shape
        assert cin_w == prev, "layer dims must chain"
        cout_pad = _round_up(cout, 128)
        wt = jnp.zeros((prev_pad, cout_pad), jnp.float32)
        wt = wt.at[:cin_w, :cout].set(jnp.asarray(w, jnp.float32).T)
        packed.append(wt.astype(jnp.bfloat16))            # MXU-native weights
        bp = jnp.zeros((1, cout_pad), jnp.float32)
        bp = bp.at[0, :cout].set(jnp.asarray(b, jnp.float32))
        packed.append(bp)                                  # f32 bias (VPU add)
        dims.append(cout)
        prev, prev_pad = cout, cout_pad
    return packed, tuple(dims)


def _choose_tm(M, tile_rows):
    """Row-tile size: 8-aligned, capped at tile_rows, and small enough that the
    row grid has >= 2 steps whenever M > 8 (so the 'parallel' axis can shard
    across both TensorCores on megacore parts; costs nothing on 1-TC chips)."""
    tile_rows = max(8, _round_up(tile_rows, 8))
    if M > 8:
        cap = _round_up(pl.cdiv(M, 2), 8)
    else:
        cap = _round_up(max(M, 1), 8)
    return min(tile_rows, cap)


# ---------------------------------------------------------------------------
# Forward wrapper.
# ---------------------------------------------------------------------------
def meta_info_forward(x, packed, dims, *, tile_rows=512, single_buffer_weights=True):
    """Fused MLP forward for x of shape (..., cin); packed/dims from pack_params."""
    num_layers = len(dims) - 1
    cin, cout_final = dims[0], dims[-1]
    cin_pad = _round_up(cin, 128)
    cout_final_pad = packed[-1].shape[-1]
    pad_input = cin != cin_pad

    lead = x.shape[:-1]
    assert x.shape[-1] == cin
    M = math.prod(lead) if lead else 1
    x2 = x.reshape(M, cin).astype(jnp.float32)    # no zero-padded HBM copy

    TM = _choose_tm(M, tile_rows)
    grid = (pl.cdiv(M, TM),)   # last tile may overrun M; OOB rows are dropped

    # Grid-invariant weights/biases: fetched once; single-buffer when supported.
    if single_buffer_weights:
        def const_spec(s):
            return pl.BlockSpec(s, lambda i: (0, 0), pipeline_mode=pl.Buffered(1))
    else:
        def const_spec(s):
            return pl.BlockSpec(s, lambda i: (0, 0))

    in_specs = [pl.BlockSpec((TM, cin), lambda i: (i, 0))]   # narrow input tile
    in_specs += [const_spec(a.shape) for a in packed]

    scratch_shapes = ([pltpu.VMEM((TM, cin_pad), jnp.float32)]
                      if pad_input else [])

    # Explicit VMEM budget (portable to v7x's 64 MiB): resident weights +
    # double-buffered x/out tiles + pad scratch + live-activation headroom.
    weight_bytes = sum(int(a.size) * a.dtype.itemsize for a in packed)
    max_np = max(a.shape[-1] for a in packed)
    needed = (2 * weight_bytes
              + 2 * TM * max(cin, 128) * 4          # x tile, double-buffered
              + 2 * TM * cout_final_pad * 4         # out tile, double-buffered
              + (TM * cin_pad * 4 if pad_input else 0)
              + 2 * TM * max_np * 4)                # activations
    vmem_limit = int(min(max(2 * needed, 16 << 20), 64 << 20))
    # TODO(synk): for dim lists too large to keep all layers VMEM-resident,
    # tile over the layer axis (pltpu.emit_pipeline) instead of raising limits.

    out = pl.pallas_call(
        _make_mlp_kernel(num_layers, cin, cin_pad),
        out_shape=jax.ShapeDtypeStruct((M, cout_final_pad), jnp.float32),
        grid=grid,
        in_specs=in_specs,
        out_specs=pl.BlockSpec((TM, cout_final_pad), lambda i: (i, 0)),
        scratch_shapes=scratch_shapes,
        compiler_params=pltpu.CompilerParams(
            dimension_semantics=("parallel",),
            vmem_limit_bytes=vmem_limit),
    )(x2, *packed)

    if cout_final != cout_final_pad:
        # In-kernel store stays lane-dense (unmasked); this slice is one extra
        # XLA copy and is skipped entirely when cout is already a 128 multiple.
        out = out[:, :cout_final]
    return out.reshape(*lead, cout_final)


def make_meta_info_forward(params, *, tile_rows=512):
    """Pack the weights once (init-time) and return a jitted forward(x)."""
    packed, dims = pack_params(params)
    single_buf = _single_buffer_supported()   # eager feature probe, once

    def fwd(x):
        return meta_info_forward(x, packed, dims, tile_rows=tile_rows,
                                 single_buffer_weights=single_buf)

    return jax.jit(fwd)


# ---------------------------------------------------------------------------
# Pure-JAX reference (verification only).
# ---------------------------------------------------------------------------
def ref_forward(x, params):
    h = x
    for w, b in params:
        h = h @ w.T + b
        h = jnp.maximum(h, 0.0)
    return h


def init_linear(key, out_f, in_f):
    kw, kb = jax.random.split(key)
    bound = 1.0 / (in_f ** 0.5)
    w = jax.random.uniform(kw, (out_f, in_f), jnp.float32, -bound, bound)
    b = jax.random.uniform(kb, (out_f,), jnp.float32, -bound, bound)
    return w, b


if __name__ == "__main__":
    # MetaInfoModel(dims=[3, 32, 64]) applied to (B, N, 3) point features.
    B, N = 2, 16
    DIMS = [3, 32, 64]

    keys = iter(jax.random.split(jax.random.PRNGKey(0), 8))
    params = [init_linear(next(keys), DIMS[i + 1], DIMS[i])
              for i in range(len(DIMS) - 1)]
    x = jax.random.normal(next(keys), (B, N, DIMS[0]), jnp.float32)

    fwd = make_meta_info_forward(params)
    y = jax.block_until_ready(fwd(x))
    assert y.shape == (B, N, DIMS[-1]), y.shape

    y_ref = ref_forward(x, params)
    max_err = float(jnp.max(jnp.abs(y - y_ref)))
    # bf16 MXU inputs (f32 accumulation) vs. an all-f32 reference.
    assert max_err < 7.5e-2, f"mismatch vs reference: {max_err}"

    print("KERNEL_OK")
</pallas_src>

<mosaic_0001>
module attributes {stable_mosaic.version = 11 : i64} {
  func.func @_probe_kernel(%arg0: i32, %arg1: memref<8x128xf32, #tpu.memory_space<vmem>>, %arg2: memref<8x128xf32, #tpu.memory_space<vmem>>) attributes {dimension_semantics = [#tpu.dimension_semantics<arbitrary>], iteration_bounds = array<i64: 2>, scalar_prefetch = 0 : i64, scratch_operands = 0 : i64, tpu.core_type = #tpu.core_type<tc>, window_params = [{pipeline_mode = #tpu.pipeline_mode<synchronous>, transform_indices = @transform_0, window_bounds = array<i64: 8, 128>}, {pipeline_mode = #tpu.pipeline_mode<synchronous>, transform_indices = @transform_1, window_bounds = array<i64: 8, 128>}]} {
    %c0 = arith.constant 0 : index
    %c0_0 = arith.constant 0 : index
    %0 = vector.load %arg1[%c0, %c0_0] : memref<8x128xf32, #tpu.memory_space<vmem>>, vector<8x128xf32>
    %c0_1 = arith.constant 0 : index
    %c0_2 = arith.constant 0 : index
    %1 = vector.load %arg2[%c0_1, %c0_2] : memref<8x128xf32, #tpu.memory_space<vmem>>, vector<8x128xf32>
    tpu.vector_store %arg2[%c0_1, %c0_2], %0 {strides = array<i32>} : memref<8x128xf32, #tpu.memory_space<vmem>>, vector<8x128xf32>,
    return
  }
  func.func @transform_0(%arg0: i32) -> (i32, i32) {
    %c0_i32 = arith.constant 0 : i32
    %c0_i32_0 = arith.constant 0 : i32
    %c0_i32_1 = arith.constant 0 : i32
    return %c0_i32, %c0_i32_0 : i32, i32
  }
  func.func @transform_1(%arg0: i32) -> (i32, i32) {
    %c0_i32 = arith.constant 0 : i32
    %c0_i32_0 = arith.constant 0 : i32
    %c0_i32_1 = arith.constant 0 : i32
    return %c0_i32, %c0_i32_0 : i32, i32
  }
}

module attributes {stable_mosaic.version = 11 : i64} {
  func.func @kernel(%arg0: i32, %arg1: memref<16x3xf32, #tpu.memory_space<vmem>>, %arg2: memref<128x128xbf16, #tpu.memory_space<vmem>>, %arg3: memref<1x128xf32, #tpu.memory_space<vmem>>, %arg4: memref<128x128xbf16, #tpu.memory_space<vmem>>, %arg5: memref<1x128xf32, #tpu.memory_space<vmem>>, %arg6: memref<16x128xf32, #tpu.memory_space<vmem>>, %arg7: memref<16x128xf32, #tpu.memory_space<vmem>>) attributes {dimension_semantics = [#tpu.dimension_semantics<parallel>], iteration_bounds = array<i64: 2>, scalar_prefetch = 0 : i64, scratch_operands = 1 : i64, tpu.core_type = #tpu.core_type<tc>, window_params = [{transform_indices = @transform_0, window_bounds = array<i64: 16, 3>}, {pipeline_mode = #tpu.pipeline_mode<synchronous>, transform_indices = @transform_1, window_bounds = array<i64: 128, 128>}, {pipeline_mode = #tpu.pipeline_mode<synchronous>, transform_indices = @transform_2, window_bounds = array<i64: 1, 128>}, {pipeline_mode = #tpu.pipeline_mode<synchronous>, transform_indices = @transform_3, window_bounds = array<i64: 128, 128>}, {pipeline_mode = #tpu.pipeline_mode<synchronous>, transform_indices = @transform_4, window_bounds = array<i64: 1, 128>}, {transform_indices = @transform_5, window_bounds = array<i64: 16, 128>}]} {
    %cst = arith.constant 0.000000e+00 : f32
    %0 = vector.broadcast %cst : f32 to vector<16x128xf32>
    %c0 = arith.constant 0 : index
    %c0_0 = arith.constant 0 : index
    %1 = vector.load %arg7[%c0, %c0_0] : memref<16x128xf32, #tpu.memory_space<vmem>>, vector<16x128xf32>
    tpu.vector_store %arg7[%c0, %c0_0], %0 {strides = array<i32>} : memref<16x128xf32, #tpu.memory_space<vmem>>, vector<16x128xf32>,
    %c0_1 = arith.constant 0 : index
    %c0_2 = arith.constant 0 : index
    %2 = vector.load %arg1[%c0_1, %c0_2] : memref<16x3xf32, #tpu.memory_space<vmem>>, vector<16x3xf32>
    %c0_3 = arith.constant 0 : index
    %c0_4 = arith.constant 0 : index
    %3 = vector.load %arg7[%c0_3, %c0_4] : memref<16x128xf32, #tpu.memory_space<vmem>>, vector<16x3xf32>
    tpu.vector_store %arg7[%c0_3, %c0_4], %2 {strides = array<i32>} : memref<16x128xf32, #tpu.memory_space<vmem>>, vector<16x3xf32>,
    %c0_5 = arith.constant 0 : index
    %c0_6 = arith.constant 0 : index
    %4 = vector.load %arg7[%c0_5, %c0_6] : memref<16x128xf32, #tpu.memory_space<vmem>>, vector<16x128xf32>
    %c0_7 = arith.constant 0 : index
    %c0_8 = arith.constant 0 : index
    %5 = vector.load %arg2[%c0_7, %c0_8] : memref<128x128xbf16, #tpu.memory_space<vmem>>, vector<128x128xbf16>
    %c0_9 = arith.constant 0 : index
    %c0_10 = arith.constant 0 : index
    %6 = vector.load %arg3[%c0_9, %c0_10] : memref<1x128xf32, #tpu.memory_space<vmem>>, vector<1x128xf32>
    %7 = arith.truncf %4 : vector<16x128xf32> to vector<16x128xbf16>
    %cst_11 = arith.constant dense<0.000000e+00> : vector<16x128xf32>
    %8 = tpu.matmul %7, %5, %cst_11 {dimension_numbers = #tpu.dot_dimension_numbers<[1], [0], [0], [1], [0, 0, 1, 1], [], []>} : vector<16x128xbf16>, vector<128x128xbf16>, vector<16x128xf32> -> vector<16x128xf32>
    %9 = vector.broadcast %6 : vector<1x128xf32> to vector<16x128xf32>
    %10 = arith.addf %8, %9 : vector<16x128xf32>
    %cst_12 = arith.constant 0.000000e+00 : f32
    %11 = vector.broadcast %cst_12 : f32 to vector<16x128xf32>
    %12 = arith.maximumf %10, %11 : vector<16x128xf32>
    %c0_13 = arith.constant 0 : index
    %c0_14 = arith.constant 0 : index
    %13 = vector.load %arg4[%c0_13, %c0_14] : memref<128x128xbf16, #tpu.memory_space<vmem>>, vector<128x128xbf16>
    %c0_15 = arith.constant 0 : index
    %c0_16 = arith.constant 0 : index
    %14 = vector.load %arg5[%c0_15, %c0_16] : memref<1x128xf32, #tpu.memory_space<vmem>>, vector<1x128xf32>
    %15 = arith.truncf %12 : vector<16x128xf32> to vector<16x128xbf16>
    %cst_17 = arith.constant dense<0.000000e+00> : vector<16x128xf32>
    %16 = tpu.matmul %15, %13, %cst_17 {dimension_numbers = #tpu.dot_dimension_numbers<[1], [0], [0], [1], [0, 0, 1, 1], [], []>} : vector<16x128xbf16>, vector<128x128xbf16>, vector<16x128xf32> -> vector<16x128xf32>
    %17 = vector.broadcast %14 : vector<1x128xf32> to vector<16x128xf32>
    %18 = arith.addf %16, %17 : vector<16x128xf32>
    %cst_18 = arith.constant 0.000000e+00 : f32
    %19 = vector.broadcast %cst_18 : f32 to vector<16x128xf32>
    %20 = arith.maximumf %18, %19 : vector<16x128xf32>
    %c0_19 = arith.constant 0 : index
    %c0_20 = arith.constant 0 : index
    %21 = vector.load %arg6[%c0_19, %c0_20] : memref<16x128xf32, #tpu.memory_space<vmem>>, vector<16x128xf32>
    tpu.vector_store %arg6[%c0_19, %c0_20], %20 {strides = array<i32>} : memref<16x128xf32, #tpu.memory_space<vmem>>, vector<16x128xf32>,
    return
  }
  func.func @transform_0(%arg0: i32) -> (i32, i32) {
    %c0_i32 = arith.constant 0 : i32
    %c0_i32_0 = arith.constant 0 : i32
    return %arg0, %c0_i32 : i32, i32
  }
  func.func @transform_1(%arg0: i32) -> (i32, i32) {
    %c0_i32 = arith.constant 0 : i32
    %c0_i32_0 = arith.constant 0 : i32
    %c0_i32_1 = arith.constant 0 : i32
    return %c0_i32, %c0_i32_0 : i32, i32
  }
  func.func @transform_2(%arg0: i32) -> (i32, i32) {
    %c0_i32 = arith.constant 0 : i32
    %c0_i32_0 = arith.constant 0 : i32
    %c0_i32_1 = arith.constant 0 : i32
    return %c0_i32, %c0_i32_0 : i32, i32
  }
  func.func @transform_3(%arg0: i32) -> (i32, i32) {
    %c0_i32 = arith.constant 0 : i32
    %c0_i32_0 = arith.constant 0 : i32
    %c0_i32_1 = arith.constant 0 : i32
    return %c0_i32, %c0_i32_0 : i32, i32
  }
  func.func @transform_4(%arg0: i32) -> (i32, i32) {
    %c0_i32 = arith.constant 0 : i32
    %c0_i32_0 = arith.constant 0 : i32
    %c0_i32_1 = arith.constant 0 : i32
    return %c0_i32, %c0_i32_0 : i32, i32
  }
  func.func @transform_5(%arg0: i32) -> (i32, i32) {
    %c0_i32 = arith.constant 0 : i32
    %c0_i32_0 = arith.constant 0 : i32
    return %arg0, %c0_i32 : i32, i32
  }
}

</mosaic_0001>

<bundles_post_ra>
// kernel: tpu_custom_call.1
= control target key start
LH: loop header
LB: loop body
LE: loop exit
PB: predicated region body
PF: predicated region fallthrough
CT: control target
= control target key end

     0   :  { %6 = vsyncpa [#allocation3], 0  ;;  %s304_s0 = inlined_call_operand.hbm [shape: f32[8,128], index: 0, kind: input, shape index: {}]   ;;  %s305_s1 = inlined_call_operand.hbm [shape: f32[8,128], index: 1, kind: output, shape index: {}]  }
   0x1   :  { %7 = vsyncpa [#allocation4], 0  ;;  %s257_s6 = smov 0  }
   0x2 LB: > { %s144_s7 = sadd.s32 4294967295, %s243_s6   ;;  %p145_p0 = scmp.ge.s32.totalorder %s243_s6, 1  ;;  %s243_s6 = sphi %s257_s6, %s13_s6  }
   0x3   : > { %p60_p1 = scmp.lt.s32.totalorder %s243_s6, 3  ;;  %p269_p3 = scmp.eq.s32.totalorder %s144_s7, 0 }
   0x4   : > { %s245_s10 = smov [#allocation2]  }
   0x5   : > { %p265_p2 = pnand %p145_p0, %p60_p1  ;;  %s73_s11 = sshll.u32 %s245_s10, 4  ;;  %s74_s11 = int_to_ptr.vmem [resolvable:$true] %s73_s11 }
   0x6   : > { %s190_s12 = scalar_lea.vmem %s74_s11, 128  ;;  %p198_p10 = scmp.lt.s32.totalorder %s74_s11, %s74_s11 }
   0x7   : > { %p161_p4 = pneg %p265_p2  ;;  %p191_p7 = scmp.ne.s32.totalorder %s74_s11, %s190_s12 }
   0x8   : > { %p199_p11 = scmp.lt.s32.totalorder %s190_s12, %s190_s12 }
   0x9   : > { %p162_p5 = pnand %p269_p3, %p161_p4 }
   0xa   : > { %p200_p12 = por %p199_p11, %p198_p10 }
   0xb   : > { %p181_p6 = pneg %p162_p5 }
   0xd   : > { %p193_p8 = pnand %p191_p7, %p181_p6 }
   0xf   : > { %p194_p9 = pneg %p193_p8 }
  0x11   : > { %p201_p13 = pnand %p200_p12, %p194_p9 }
  0x13   : > { %204 = shalt.err (!%p201_p13)
}
  0x14   : > { %164 = dma.hbm_to_vmem [thread:$0]  (!%p162_p5), %s304_s0, 128, %s74_s11, [#allocation3]  }
  0x15   : > { %86 = sbr.rel (%p265_p2) target bundleno = 42 (0x2a), region = 24 }
  0x1a   : > { %234 = dma.done.wait (%p269_p3), [#allocation3], 128  }
  0x1b   : > { %236 = vsyncadd (%p269_p3), [#allocation3], 4294967168  ;;  %s246_s15 = smov [#allocation5]   ;;  %p286_p0 = scmp.eq.s32.totalorder %s144_s7, 1  ;;  %v96_v0 = vld [vmem:[#allocation2] sm:$0xff] }
  0x1c   : > { %s105_s16 = sshll.u32 %s246_s15, 4  ;;  %97 = vst [vmem:[#allocation5] sm:$0xff] %v96_v0  ;;  %s106_s16 = int_to_ptr.vmem [resolvable:$true] %s105_s16 }
  0x1d   : > { %s205_s18 = scalar_lea.vmem %s106_s16, 128  ;;  %p212_p5 = scmp.lt.s32.totalorder %s106_s16, %s106_s16 }
  0x1e   : > { %p206_p1 = scmp.ne.s32.totalorder %s106_s16, %s205_s18  ;;  %p213_p6 = scmp.lt.s32.totalorder %s205_s18, %s205_s18 }
  0x20   : > { %p207_p2 = pnand %p206_p1, %p286_p0  ;;  %p214_p7 = por %p213_p6, %p212_p5 }
  0x22   : > { %p208_p4 = pneg %p207_p2 }
  0x24   : > { %p215_p8 = pnand %p214_p7, %p208_p4 }
  0x26   : > { %218 = shalt.err (!%p215_p8)
}
  0x27   : > { %158 = dma.vmem_to_hbm [thread:$0]  (%p286_p0), %s106_s16, 128, %s305_s1, [#allocation4]  }
  0x28   : > { %238 = dma.done.wait (%p286_p0), [#allocation4], 128  }
  0x29   : > { %240 = vsyncadd (%p286_p0), [#allocation4], 4294967168 }
  0x2a PF: > { %s13_s6 = sadd.s32 1, %s243_s6  }
  0x2b   : > { %p10_p3 = scmp.ge.s32.totalorder %s13_s6, 4  }
  0x2d   :  { %12 = sbr.rel (!%p10_p3) target bundleno = 2 (0x2), region = 53 }
  0x32   :  { %118 = vsyncpa [#allocation3], 1 }
  0x33   :  { %120 = vsyncpa [#allocation3 + $0x1], 1 }
  0x34   :  { %121 = vsyncpa [#allocation4], 1 }
  0x35   :  { %123 = vsyncpa [#allocation4 + $0x1], 1 }

// kernel: fwd.1
= control target key start
LH: loop header
LB: loop body
LE: loop exit
PB: predicated region body
PF: predicated region fallthrough
CT: control target
= control target key end

     0   :  { %10 = vsyncpa [#allocation4], 0  ;;  %s1100_s0 = inlined_call_operand.vmem [shape: f32[32,3], index: 0, kind: input, shape index: {}]   ;;  %s1101_s1 = inlined_call_operand.hbm [shape: bf16[128,128], index: 1, kind: input, shape index: {}]   ;;  %s1102_s2 = inlined_call_operand.vmem [shape: f32[1,128], index: 2, kind: input, shape index: {}]   ;;  %s1103_s3 = inlined_call_operand.hbm [shape: bf16[128,128], index: 3, kind: input, shape index: {}]   ;;  %s1104_s4 = inlined_call_operand.vmem [shape: f32[1,128], index: 4, kind: input, shape index: {}]   ;;  %s1105_s5 = inlined_call_operand.hbm [shape: f32[32,128], index: 5, kind: output, shape index: {}]  }
   0x1   :  { %11 = vsyncpa [#allocation7], 0 }
   0x2   :  { %12 = vsyncpa [#allocation5], 0 }
   0x3   :  { %14 = vsyncpa [#allocation5 + $0x1], 0  ;;  %s932_s18 = smov 0   ;;  %s934_s19 = smov 0  }
   0x4   :  { %s936_s20 = smov 0   ;;  %s938_s21 = smov 0  }
   0x5 LB: > { %s953_s22 = sadd.s32 4294967295, %s891_s21   ;;  %s596_s23 = sadd.s32 4294967294, %s891_s21   ;;  %s891_s21 = sphi %s938_s21, %s1119_s21   ;;  %s887_s20 = sphi %s936_s20, %s1118_s20   ;;  %s883_s19 = sphi %s934_s19, %s1117_s19   ;;  %s879_s18 = sphi %s932_s18, %s1116_s18  }
   0x6   : > { %s957_s24 = sadd.s32 1, %s891_s21   ;;  %s137_s25 = sadd.s32 1, %s887_s20 }
   0x7   : > { %s134_s26 = ssub.s32 %s891_s21, %s957_s24  ;;  %p147_p0 = scmp.ne.s32.totalorder %s887_s20, %s883_s19 }
   0x8   : > { %p135_p1 = scmp.eq.s32.totalorder %s134_s26, 0  ;;  %p148_p2 = scmp.eq.s32.totalorder %s953_s22, 1 }
   0x9   : > { %p153_p3 = scmp.ne.s32.totalorder %s883_s19, %s879_s18  ;;  %p154_p4 = scmp.eq.s32.totalorder %s596_s23, 1 }
   0xa   : > { %s968_s27 = scalar_select %p135_p1, %s887_s20, %s137_s25  }
   0xb   : > { %p970_p5 = por %p148_p2, %p147_p0  ;;  %p974_p6 = por %p154_p4, %p153_p3 }
   0xc   : > { %p597_p7 = scmp.ge.s32.totalorder %s891_s21, 1  ;;  %p161_p8 = scmp.lt.s32.totalorder %s891_s21, 3 }
   0xd   : > { %s1108_s29 = scalar_select %p974_p6, 1, 0 }
   0xe   : > { %p1106_p9 = scmp.eq.s32.totalorder %s953_s22, 0  ;;  %p981_p10 = pnand %p597_p7, %p161_p8 }
   0xf   : > { %s893_s6 = smov [#allocation3]   ;;  %s894_s9 = smov [#allocation6]  }
  0x10   : > { %s173_s7 = sshll.u32 %s893_s6, 4  ;;  %p699_p11 = pneg %p981_p10  ;;  %s174_s7 = int_to_ptr.vmem [resolvable:$true] %s173_s7 }
  0x11   : > { %s189_s10 = sshll.u32 %s894_s9, 4  ;;  %s782_s11 = scalar_lea.vmem %s174_s7, 1024  ;;  %s190_s10 = int_to_ptr.vmem [resolvable:$true] %s189_s10 }
  0x12   : > { %p989_p12 = pnand %p1106_p9, %p699_p11  ;;  %p783_p0 = scmp.ne.s32.totalorder %s174_s7, %s782_s11 }
  0x13   : > { %p790_p3 = scmp.lt.s32.totalorder %s174_s7, %s174_s7  ;;  %p791_p4 = scmp.lt.s32.totalorder %s782_s11, %s782_s11 }
  0x14   : > { %p773_p13 = pneg %p989_p12 }
  0x15   : > { %p792_p7 = por %p791_p4, %p790_p3 }
  0x16   : > { %p785_p1 = pnand %p783_p0, %p773_p13 }
  0x18   : > { %p786_p2 = pneg %p785_p1 }
  0x1a   : > { %p793_p8 = pnand %p792_p7, %p786_p2 }
  0x1c   : > { %796 = shalt.err (!%p793_p8)
}
  0x1d   : > { %s895_s12 = smov 64   ;;  %s896_s13 = smov 4  }
  0x1e   : > { %702 = dma.hbm_to_vmem [thread:$0]  (!%p989_p12), %s1101_s1, 1024, %s174_s7, [#allocation4], %s895_s12, %s895_s12, %s896_s13  }
  0x1f   : > { %s808_s16 = scalar_lea.vmem %s190_s10, 1024  ;;  %p816_p9 = scmp.lt.s32.totalorder %s190_s10, %s190_s10 }
  0x20   : > { %p809_p11 = scmp.ne.s32.totalorder %s190_s10, %s808_s16  ;;  %p817_p6 = scmp.lt.s32.totalorder %s808_s16, %s808_s16 }
  0x22   : > { %p811_p0 = pnand %p809_p11, %p773_p13  ;;  %p818_p3 = por %p817_p6, %p816_p9 }
  0x24   : > { %p812_p1 = pneg %p811_p0 }
  0x26   : > { %p819_p2 = pnand %p818_p3, %p812_p1 }
  0x28   : > { %822 = shalt.err (!%p819_p2)
}
  0x29   : > { %705 = dma.hbm_to_vmem [thread:$0]  (!%p989_p12), %s1103_s3, 1024, %s190_s10, [#allocation7], %s895_s12, %s895_s12, %s896_s13  }
  0x2a   : > { %217 = sbr.rel (%p981_p10) target bundleno = 503 (0x1f7), region = 40  ;;  %p1111_p4 = scmp.eq.s32.totalorder (!%p981_p10), %s953_s22, 0 }
  0x2f   : > { %866 = dma.done.wait (%p1111_p4), [#allocation4], 1024   ;;  %p1112_p13 = pmov %p1111_p4 }
  0x30   : > { %p1113_p7 = pmov %p1111_p4 }
  0x31   : > { %868 = vsyncadd (%p1112_p13), [#allocation4], 4294966272 }
  0x32   : > { %870 = dma.done.wait (%p1113_p7), [#allocation7], 1024   ;;  %p1114_p6 = pmov %p1111_p4 }
  0x33   : > { %s605_s25 = sshll.u32 %s953_s22, 1  ;;  %v897_v0 = vmov 0.0   ;;  %vm898_vm0 = vmmov 0   ;;  %v755_v1 = vld [vmem:[#allocation3 + $0x38] sm:$0xff]   ;;  %v756_v2 = vld [vmem:[#allocation3 + $0x30] sm:$0xff]   ;;  %v757_v3 = vld [vmem:[#allocation3 + $0x28] sm:$0xff]  }
  0x34   : > { %872 = vsyncadd (%p1114_p6), [#allocation7], 4294966272  ;;  %649 = vmatprep.subr.bf16.mxu0 %v897_v0  ;;  %257 = vst [vmem:[#allocation2] sm:$0xff] %v897_v0  ;;  %665 = vmatprep.mubr.msk.bf16.mxu0 %vm898_vm0, %v897_v0  ;;  %p250_p9 = scmp.lt.s32.totalorder %s605_s25, 3  ;;  %vm261_vm1 = vcmask 23552   ;;  %v763_v6 = vld [vmem:[#allocation6 + $0x38] sm:$0xff]  }
  0x35   : > { %258 = vst [vmem:[#allocation2 + $0x8] sm:$0xff] %v897_v0  ;;  %669 = vmatprep.subr.bf16.mxu1 %v897_v0  ;;  %685 = vmatprep.mubr.msk.bf16.mxu1 %vm898_vm0, %v897_v0  ;;  %v758_v7 = vld [vmem:[#allocation3 + $0x20] sm:$0xff]   ;;  %v764_v8 = vld [vmem:[#allocation6 + $0x30] sm:$0xff]   ;;  %v759_v9 = vld [vmem:[#allocation3 + $0x18] sm:$0xff]   ;;  %s246_s10 = sand.u32 1, %s883_s19   ;;  %s630_s16 = sshll.u32 %s953_s22, 8 }
  0x36   : > { %s1121_s25 = smov (!%p250_p9, %s605_s25), 3  ;;  %650 = vmatpush3.bf16.msra.mxu0 %v755_v1  ;;  %670 = vmatpush3.bf16.msra.mxu1 %v763_v6  ;;  %v765_v10 = vld [vmem:[#allocation6 + $0x28] sm:$0xff]   ;;  %v760_v11 = vld [vmem:[#allocation3 + $0x10] sm:$0xff]   ;;  %v766_v12 = vld [vmem:[#allocation6 + $0x20] sm:$0xff]   ;;  %s604_s13 = sshll.u32 %s246_s10, 4 }
  0x37   : > { %s606_s26 = sshll.u32 %s1121_s25, 3  ;;  %651 = vmatprep.subr.bf16.mxu0 %v897_v0  ;;  %671 = vmatprep.subr.bf16.mxu1 %v897_v0  ;;  %v761_v13 = vld [vmem:[#allocation3 + $0x8] sm:$0xff]   ;;  %v767_v14 = vld [vmem:[#allocation6 + $0x18] sm:$0xff]   ;;  %v762_v15 = vld [vmem:[#allocation3] sm:$0xff]   ;;  %s248_s14 = scalar_lea.vmem [#allocation8], %s604_s13 }
  0x38   : > { %s253_s7 = scalar_lea.vmem %s1100_s0, %s606_s26  ;;  %v768_v19 = vld [vmem:[#allocation6 + $0x10] sm:$0xff]   ;;  %v769_v20 = vld [vmem:[#allocation6 + $0x8] sm:$0xff]   ;;  %v770_v21 = vld [vmem:[#allocation6] sm:$0xff]   ;;  %s512_s15 = sshll.u32 %s248_s14, 4  ;;  %s1053_s15 = int_to_ptr.vmem [resolvable:$true] %s512_s15 }
  0x39   : > { %v259_v4 = vld [vmem:[%s253_s7] sm:$0xff]  ;;  %v260_v5 = vld [vmem:[%s253_s7 + $0x8] sm:$0xff]  ;;  %s1058_s25 = scalar_lea.hbm %s1105_s5, %s630_s16  ;;  %s1060_s26 = scalar_lea.sflag [#allocation5], %s246_s10 }
  0x3a   : > { %652 = vmatpush3.bf16.msra.mxu0 %v756_v2  ;;  %262 = vst.msk [vmem:[#allocation2] sm:$0xff] %vm261_vm1, %v259_v4  ;;  %263 = vst.msk [vmem:[#allocation2 + $0x8] sm:$0xff] %vm261_vm1, %v260_v5  ;;  %672 = vmatpush3.bf16.msra.mxu1 %v764_v8  ;;  %v607_v22 = vld [vmem:[%s1102_s2] ss:$0 sm:$0xff]  ;;  %s823_s30 = scalar_lea.vmem %s1053_s15, 256  ;;  %s899_s22 = smov [#allocation8]  }
  0x3b   : > { %653 = vmatprep.subr.bf16.mxu0 %v897_v0  ;;  %673 = vmatprep.subr.bf16.mxu1 %v897_v0  ;;  %v616_v32 = vld [vmem:[%s1104_s4] ss:$0 sm:$0xff]  ;;  %p824_p10 = scmp.ne.s32.totalorder %s1053_s15, %s823_s30  ;;  %s827_s6 = sshll.u32 %s899_s22, 4  ;;  %s828_s6 = int_to_ptr.vmem [resolvable:$false] %s827_s6 }
  0x3c   : > { %s829_s7 = scalar_lea.vmem %s828_s6, 512  ;;  %p830_p11 = scmp.lt.s32.totalorder %s1053_s15, %s828_s6 }
  0x3d   : > { %p825_p12 = pnand %p824_p10, %p970_p5  ;;  %p831_p0 = scmp.lt.s32.totalorder %s829_s7, %s823_s30 }
  0x3e   : > { %654 = vmatpush3.bf16.msra.mxu0 %v757_v3  ;;  %674 = vmatpush3.bf16.msra.mxu1 %v765_v10 }
  0x3f   : > { %655 = vmatprep.subr.bf16.mxu0 %v897_v0  ;;  %675 = vmatprep.subr.bf16.mxu1 %v897_v0  ;;  %p826_p8 = pneg %p825_p12  ;;  %p832_p1 = por %p831_p0, %p830_p11 }
  0x41   : > { %v264_v16 = vld [vmem:[#allocation2] sm:$0xff]  ;;  %v265_v17 = vld [vmem:[#allocation2 + $0x8] sm:$0xff]  ;;  %p833_p3 = pnand %p832_p1, %p826_p8 }
  0x42   : > { %656 = vmatpush3.bf16.msra.mxu0 %v758_v7  ;;  %676 = vmatpush3.bf16.msra.mxu1 %v766_v12  ;;  %v283_v18 = vpack.c.bf16 %v265_v17, %v264_v16 }
  0x43   : > { %657 = vmatprep.subr.bf16.mxu0 %v897_v0  ;;  %677 = vmatprep.subr.bf16.mxu1 %v897_v0 }
  0x46   : > { %658 = vmatpush3.bf16.msra.mxu0 %v759_v9  ;;  %678 = vmatpush3.bf16.msra.mxu1 %v767_v14 }
  0x47   : > { %659 = vmatprep.subr.bf16.mxu0 %v897_v0  ;;  %679 = vmatprep.subr.bf16.mxu1 %v897_v0 }
  0x4a   : > { %660 = vmatpush3.bf16.msra.mxu0 %v760_v11  ;;  %680 = vmatpush3.bf16.msra.mxu1 %v768_v19 }
  0x4b   : > { %661 = vmatprep.subr.bf16.mxu0 %v897_v0  ;;  %681 = vmatprep.subr.bf16.mxu1 %v897_v0 }
  0x4e   : > { %662 = vmatpush3.bf16.msra.mxu0 %v761_v13  ;;  %682 = vmatpush3.bf16.msra.mxu1 %v769_v20 }
  0x4f   : > { %663 = vmatprep.subr.bf16.mxu0 %v897_v0  ;;  %683 = vmatprep.subr.bf16.mxu1 %v897_v0 }
  0x52   : > { %664 = vmatpush3.bf16.msra.mxu0 %v762_v15  ;;  %684 = vmatpush3.bf16.msra.mxu1 %v770_v21 }
  0x55   : > { %666 = vmatmul.mubr.bf16.vlgmr.msra.gmra.mxu0 %v283_v18 }
 0x115   : > { %v372_v23 = vpop.f32.mrf.mxu0 }
 0x116   : > { %v373_v25 = vadd.f32 %v607_v22, %v372_v23 }
 0x117   : > { %v667_v24 = vpop.f32.mrf.mxu0 }
 0x118   : > { %v379_v29 = vmax.f32 %v373_v25, 0.0 }
 0x119   : > { %v375_v26 = vpop.f32.mrf.mxu0 }
 0x11a   : > { %v376_v27 = vadd.f32 %v607_v22, %v375_v26 }
 0x11b   : > { %v668_v28 = vpop.f32.mrf.mxu0 }
 0x11c   : > { %v380_v30 = vmax.f32 %v376_v27, 0.0 }
 0x11e   : > { %v398_v31 = vpack.c.bf16 %v380_v30, %v379_v29 }
 0x120   : > { %686 = vmatmul.mubr.bf16.vlgmr.msra.gmra.mxu1 %v398_v31 }
 0x1e0   : > { %v487_v33 = vpop.f32.mrf.mxu1 }
 0x1e1   : > { %v488_v34 = vadd.f32 %v616_v32, %v487_v33 }
 0x1e2   : > { %v687_v35 = vpop.f32.mrf.mxu1 }
 0x1e3   : > { %v494_v36 = vmax.f32 %v488_v34, 0.0 }
 0x1e4   : > { %v490_v37 = vpop.f32.mrf.mxu1 }
 0x1e5   : > { %496 = vst [vmem:[%s248_s14] sm:$0xff] %v494_v36  ;;  %v491_v38 = vadd.f32 %v616_v32, %v490_v37 }
 0x1e6   : > { %v688_v39 = vpop.f32.mrf.mxu1 }
 0x1e7   : > { %v495_v40 = vmax.f32 %v491_v38, 0.0 }
 0x1e9   : > { %497 = vst [vmem:[%s248_s14 + $0x8] sm:$0xff] %v495_v40 }
 0x1ea   : > { %836 = shalt.err (!%p833_p3)
}
 0x1eb   : > { %s837_s8 = scalar_lea.hbm %s1058_s25, 256  ;;  %s841_s11 = scalar_lea.hbm %s1105_s5, 512 }
 0x1ec   : > { %p838_p2 = scmp.ne.s32.totalorder %s1058_s25, %s837_s8  ;;  %p842_p7 = scmp.lt.s32.totalorder %s1058_s25, %s1105_s5 }
 0x1ed   : > { %p843_p6 = scmp.lt.s32.totalorder %s841_s11, %s837_s8 }
 0x1ee   : > { %p839_p4 = pnand %p838_p2, %p970_p5 }
 0x1ef   : > { %p844_p9 = por %p843_p6, %p842_p7 }
 0x1f0   : > { %p840_p13 = pneg %p839_p4 }
 0x1f2   : > { %p845_p10 = pnand %p844_p9, %p840_p13 }
 0x1f4   : > { %848 = shalt.err (!%p845_p10)
}
 0x1f5   : > { %s900_s14 = smov 128   ;;  %s901_s16 = smov 8  }
 0x1f6   : > { %697 = dma.vmem_to_hbm [thread:$0]  (%p970_p5), %s1053_s15, 256, %s1058_s25, %s1060_s26, %s900_s14, %s900_s14, %s901_s16  }
 0x1f7 PF: > { %p714_p12 = scmp.ge.s32.totalorder %s891_s21, 2  ;;  %s527_s17 = sand.u32 1, %s879_s18  }
 0x1f8   : > { %p1115_p8 = scmp.ne.s32.totalorder %s1108_s29, 0  ;;  %s528_s23 = scalar_lea.sflag [#allocation5], %s527_s17 }
 0x1fa   : > { %p707_p11 = pnand %p714_p12, %p1115_p8 }
 0x1fc   : > { %p708_p0 = pneg %p707_p11 }
 0x1fe   : > { %874 = dma.done.wait (%p708_p0), %s528_s23, 256  }
 0x1ff   : > { %876 = vsyncadd (%p708_p0), %s528_s23, 4294967040  ;;  %p17_p1 = scmp.ge.s32.totalorder %s957_s24, 4   ;;  %s1116_s18 = smov %s883_s19 }
 0x200   : > { %s1117_s19 = smov %s887_s20  ;;  %s1118_s20 = smov %s968_s27 }
 0x201   : > { %s1119_s21 = smov %s957_s24  ;;  %19 = sbr.rel (!%p17_p1) target bundleno = 5 (0x5), region = 84 }
 0x206   :  { %533 = vsyncpa [#allocation4], 1 }
 0x207   :  { %535 = vsyncpa [#allocation4 + $0x1], 1 }
 0x208   :  { %536 = vsyncpa [#allocation7], 1 }
 0x209   :  { %537 = vsyncpa [#allocation5], 1 }
 0x20a   :  { %539 = vsyncpa [#allocation5 + $0x1], 1 }

</bundles_post_ra>
